<compile_context>
chip_gen: v6e
topology: v6e:2x2x1
jax: 0.10.0
libtpu: 0.0.40
codegen_flags: <defaults>
</compile_context>

<pallas_src>
import functools

import jax
import jax.numpy as jnp
from jax.experimental import pallas as pl
from jax.experimental.pallas import tpu as pltpu


def _round_up(n, m):
    return ((n + m - 1) // m) * m


# ----------------------------------------------------------------------------
# Pallas kernels
# ----------------------------------------------------------------------------
def _mm_stats_kernel(x_ref, w_ref, y_ref, s_ref, ss_ref, acc_ref):
    """Tiled matmul (bf16 HBM I/O, f32 VMEM accumulator) + per-channel
    sum / sum-of-squares accumulated across the whole grid (BN statistics).
    Grid = (M blocks, K blocks); K is the reduction axis (innermost)."""
    m, k = pl.program_id(0), pl.program_id(1)
    nk = pl.num_programs(1)

    @pl.when((m == 0) & (k == 0))
    def _init_stats():
        s_ref[...] = jnp.zeros_like(s_ref)
        ss_ref[...] = jnp.zeros_like(ss_ref)

    @pl.when(k == 0)
    def _init_acc():
        acc_ref[...] = jnp.zeros_like(acc_ref)

    acc_ref[...] += jnp.dot(x_ref[...], w_ref[...],
                            preferred_element_type=jnp.float32)

    @pl.when(k == nk - 1)
    def _finalize():
        acc = acc_ref[...]
        y_ref[...] = acc.astype(y_ref.dtype)
        s_ref[...] += jnp.sum(acc, axis=0, keepdims=True)
        ss_ref[...] += jnp.sum(acc * acc, axis=0, keepdims=True)


def _bn_mm_stats_kernel(n_rows, x_ref, sc_ref, sh_ref, w_ref, y_ref, s_ref, ss_ref):
    """Fused: BN(prev)+ReLU prologue on the bf16 input tile, 1x1-conv matmul
    (bf16 operands / f32 accumulation), BN stats of the output accumulated across
    the M grid axis.  Rows >= n_rows are wrapper zero-padding and are masked out
    so they contribute nothing to the output or the statistics."""
    m = pl.program_id(0)
    bm = x_ref.shape[0]

    @pl.when(m == 0)
    def _init():
        s_ref[...] = jnp.zeros_like(s_ref)
        ss_ref[...] = jnp.zeros_like(ss_ref)

    xn = jnp.maximum(x_ref[...].astype(jnp.float32) * sc_ref[...] + sh_ref[...], 0.0)
    if n_rows is not None:                       # only traced when padding exists
        row = m * bm + jax.lax.broadcasted_iota(jnp.int32, (bm, 1), 0)
        xn = jnp.where(row < n_rows, xn, 0.0)
    y = jnp.dot(xn.astype(jnp.bfloat16), w_ref[...],
                preferred_element_type=jnp.float32)
    y_ref[...] = y.astype(y_ref.dtype)
    s_ref[...] += jnp.sum(y, axis=0, keepdims=True)
    ss_ref[...] += jnp.sum(y * y, axis=0, keepdims=True)


def _conv3x3_kernel(y1_ref, sc_ref, sh_ref, w2_ref, y2_ref, s_ref, ss_ref,
                    pad_ref, cols_ref, acc_ref):
    """3x3 conv (stride 1, pad 1) for one image:
       - bn1+relu applied in the prologue (no extra HBM pass),
       - zero-padded halo kept in a VMEM scratch,
       - 3 column-shifted copies of the halo so every (kh, kw) tap window is a
         contiguous leading-row slice (no per-tap sublane-offset slice+reshape),
       - 9 MXU matmuls accumulated into an f32 VMEM scratch (no vreg spills),
       - bn2 statistics accumulated across the (sequential) batch grid axis."""
    b = pl.program_id(0)
    _, H, W, Cin = y1_ref.shape
    Cout = w2_ref.shape[-1]

    @pl.when(b == 0)
    def _init_stats():
        s_ref[...] = jnp.zeros_like(s_ref)
        ss_ref[...] = jnp.zeros_like(ss_ref)

    # bn1 + relu, zero-padded halo.
    pad_ref[...] = jnp.zeros_like(pad_ref)
    sc = sc_ref[...].reshape(1, 1, Cin)
    sh = sh_ref[...].reshape(1, 1, Cin)
    y1n = jnp.maximum(y1_ref[0].astype(jnp.float32) * sc + sh, 0.0)
    pad_ref[1:H + 1, 1:W + 1, :] = y1n

    # cols_ref[kw] = pad[:, kw:kw+W, :] flattened to ((H+2)*W, Cin): each tap below
    # becomes a plain slice of rows [kh*W, kh*W + H*W) -- sublane aligned for W%8==0.
    for kw in range(3):
        cols_ref[kw] = pad_ref[:, kw:kw + W, :].reshape((H + 2) * W, Cin)

    acc_ref[...] = jnp.zeros_like(acc_ref)
    for kh in range(3):
        for kw in range(3):
            win = cols_ref[kw, kh * W:kh * W + H * W, :]
            acc_ref[...] += jnp.dot(win.astype(jnp.bfloat16), w2_ref[kh * 3 + kw],
                                    preferred_element_type=jnp.float32)

    acc = acc_ref[...]
    y2_ref[0] = acc.reshape(H, W, Cout).astype(y2_ref.dtype)
    s_ref[...] += jnp.sum(acc, axis=0, keepdims=True)
    ss_ref[...] += jnp.sum(acc * acc, axis=0, keepdims=True)


def _swap_major(x):
    """(A, B, C) -> (B, A, C) in-VMEM transpose (lane dim unchanged)."""
    return pltpu.einshape("abc->bac", x)


def _cca_kernel(gamma_ref, mask_ref, y3_ref, xr_ref, sc_ref, sh_ref,
                wqkv_ref, bqkv_ref, o_ref):
    """Criss-Cross attention for one image, fused with:
       - bn3 apply (folded per-channel scale/shift),
       - ONE packed q|k|v 1x1 projection (single lane-dense MXU matmul),
       - joint softmax over the row + column candidates (EUP approx reciprocal),
       - gamma scale, residual add and the final ReLU of the Bottleneck block.
    The column (H) direction uses small in-VMEM transposes of q/k/v (flash-style
    leading-batch einsums); its output is transposed back and summed in-register,
    so the kernel writes the finished block output in one pass."""
    f32, bf16 = jnp.float32, jnp.bfloat16
    _, H, W, C = y3_ref.shape
    Nq = wqkv_ref.shape[-1]
    Cq = (Nq - C) // 2
    gamma = gamma_ref[0]

    sc = sc_ref[...].reshape(1, 1, C)
    sh = sh_ref[...].reshape(1, 1, C)
    y3n = y3_ref[0].astype(f32) * sc + sh                        # bn3 applied (H,W,C)

    qkv = (jnp.dot(y3n.reshape(H * W, C).astype(bf16), wqkv_ref[...],
                   preferred_element_type=f32) + bqkv_ref[...])
    q = qkv[:, :Cq].reshape(H, W, Cq)
    k = qkv[:, Cq:2 * Cq].reshape(H, W, Cq)
    v = qkv[:, 2 * Cq:].reshape(H, W, C)

    # W-major copies for the column (H) direction.
    qT = _swap_major(q)                                          # (W, H, Cq)
    kT = _swap_major(k)
    vT = _swap_major(v)                                          # (W, H, C)

    # Row (W) direction batched over h; column (H) direction batched over w.
    e_w = jnp.einsum('hwc,hpc->hwp', q.astype(bf16), k.astype(bf16),
                     preferred_element_type=f32)                 # (H, W, W)
    e_h = jnp.einsum('whc,wpc->whp', qT.astype(bf16), kT.astype(bf16),
                     preferred_element_type=f32)                 # (W, H, H)
    e_h = e_h + mask_ref[...][None, :, :]                        # -inf self-mask (H dir)

    # Joint softmax over the W + H candidates of each pixel (f32).
    m_hw = jnp.maximum(jnp.max(e_w, axis=-1), jnp.max(e_h, axis=-1).T)   # (H, W)
    p_w = jnp.exp(e_w - m_hw[:, :, None])
    p_h = jnp.exp(e_h - m_hw.T[:, :, None])
    denom = jnp.sum(p_w, axis=-1) + jnp.sum(p_h, axis=-1).T              # (H, W)
    inv = pl.reciprocal(denom, approx=True)                              # EUP slot

    out_w = jnp.einsum('hwp,hpc->hwc', p_w.astype(bf16), v.astype(bf16),
                       preferred_element_type=f32)               # (H, W, C)
    out_hT = jnp.einsum('whp,wpc->whc', p_h.astype(bf16), vT.astype(bf16),
                        preferred_element_type=f32)              # (W, H, C)
    out_h = pltpu.einshape("whc->hwc", out_hT)

    res = gamma * inv[:, :, None] * (out_w + out_h) + y3n + xr_ref[0].astype(f32)
    o_ref[0] = jnp.maximum(res, 0.0).astype(o_ref.dtype)


# ----------------------------------------------------------------------------
# Pallas wrappers
# ----------------------------------------------------------------------------
def conv1x1_stats(x2d, w, *, tm=512, tk=512):
    """1x1 conv as a tiled matmul over M=B*H*W (bf16 HBM I/O, f32 accumulation),
    plus per-channel (sum, sum_sq) BN statistics accumulated across grid steps.
    Non-divisible M/K are zero-padded (zero rows/cols change nothing)."""
    M, K = x2d.shape
    N = w.shape[1]
    bm = min(tm, _round_up(M, 8))
    Mp = _round_up(M, bm)
    bk = K if K <= tk else tk
    Kp = _round_up(K, bk)
    if Mp != M or Kp != K:
        x2d = jnp.pad(x2d, ((0, Mp - M), (0, Kp - K)))
    if Kp != K:
        w = jnp.pad(w, ((0, Kp - K), (0, 0)))
    y, s, ss = pl.pallas_call(
        _mm_stats_kernel,
        out_shape=(jax.ShapeDtypeStruct((Mp, N), jnp.bfloat16),
                   jax.ShapeDtypeStruct((1, N), jnp.float32),
                   jax.ShapeDtypeStruct((1, N), jnp.float32)),
        grid=(Mp // bm, Kp // bk),
        in_specs=[pl.BlockSpec((bm, bk), lambda m, k: (m, k)),
                  pl.BlockSpec((bk, N), lambda m, k: (k, 0))],
        out_specs=(pl.BlockSpec((bm, N), lambda m, k: (m, 0)),
                   pl.BlockSpec((1, N), lambda m, k: (0, 0)),
                   pl.BlockSpec((1, N), lambda m, k: (0, 0))),
        scratch_shapes=[pltpu.VMEM((bm, N), jnp.float32)],
        # The BN-stat accumulator is revisited on every step, so both axes stay
        # 'arbitrary'.  TODO(synk): emit per-M-block partial stats to unlock
        # 'parallel' M for v7x's dual TensorCore.
        compiler_params=pltpu.CompilerParams(
            dimension_semantics=("arbitrary", "arbitrary")),
    )(x2d, w)
    if Mp != M:
        y = y[:M]
    return y, s, ss


def conv1x1_bn_in_stats(x2d, scale, shift, w, *, tm=512):
    """BN(prev)+ReLU prologue + 1x1-conv matmul + BN stats of the output."""
    M, K = x2d.shape
    N = w.shape[1]
    bm = min(tm, _round_up(M, 8))
    Mp = _round_up(M, bm)
    if Mp != M:
        x2d = jnp.pad(x2d, ((0, Mp - M), (0, 0)))
    kernel = functools.partial(_bn_mm_stats_kernel, M if Mp != M else None)
    y, s, ss = pl.pallas_call(
        kernel,
        out_shape=(jax.ShapeDtypeStruct((Mp, N), jnp.bfloat16),
                   jax.ShapeDtypeStruct((1, N), jnp.float32),
                   jax.ShapeDtypeStruct((1, N), jnp.float32)),
        grid=(Mp // bm,),
        in_specs=[pl.BlockSpec((bm, K), lambda m: (m, 0)),
                  pl.BlockSpec((1, K), lambda m: (0, 0)),
                  pl.BlockSpec((1, K), lambda m: (0, 0)),
                  pl.BlockSpec((K, N), lambda m: (0, 0))],
        out_specs=(pl.BlockSpec((bm, N), lambda m: (m, 0)),
                   pl.BlockSpec((1, N), lambda m: (0, 0)),
                   pl.BlockSpec((1, N), lambda m: (0, 0))),
        compiler_params=pltpu.CompilerParams(dimension_semantics=("arbitrary",)),
    )(x2d, scale, shift, w)
    if Mp != M:
        y = y[:M]
    return y, s, ss


def conv3x3_bn_in_stats(y1_4d, scale1, shift1, w2_taps):
    """3x3 conv, stride 1, pad 1, per image; bn1+relu fused; bn2 stats emitted."""
    B, H, W, Cin = y1_4d.shape
    Cout = w2_taps.shape[-1]
    y2, s, ss = pl.pallas_call(
        _conv3x3_kernel,
        out_shape=(jax.ShapeDtypeStruct((B, H, W, Cout), jnp.bfloat16),
                   jax.ShapeDtypeStruct((1, Cout), jnp.float32),
                   jax.ShapeDtypeStruct((1, Cout), jnp.float32)),
        grid=(B,),
        in_specs=[pl.BlockSpec((1, H, W, Cin), lambda b: (b, 0, 0, 0)),
                  pl.BlockSpec((1, Cin), lambda b: (0, 0)),
                  pl.BlockSpec((1, Cin), lambda b: (0, 0)),
                  pl.BlockSpec((9, Cin, Cout), lambda b: (0, 0, 0))],
        out_specs=(pl.BlockSpec((1, H, W, Cout), lambda b: (b, 0, 0, 0)),
                   pl.BlockSpec((1, Cout), lambda b: (0, 0)),
                   pl.BlockSpec((1, Cout), lambda b: (0, 0))),
        scratch_shapes=[pltpu.VMEM((H + 2, W + 2, Cin), jnp.float32),
                        pltpu.VMEM((3, (H + 2) * W, Cin), jnp.float32),
                        pltpu.VMEM((H * W, Cout), jnp.float32)],
        # TODO(synk): H-strip tiling (1-row halo) for v7x's 64 MiB VMEM at large
        # feature maps; whole-image blocks are fine at CIFAR scales.
        compiler_params=pltpu.CompilerParams(dimension_semantics=("arbitrary",)),
    )(y1_4d, scale1, shift1, w2_taps)
    return y2, s, ss


def cca_residual_out(gamma, mask, y3_4d, x_res, scale3, shift3, wqkv, bqkv):
    """Fused bn3 + criss-cross attention + residual + ReLU; writes the final
    block output (NHWC, f32) in a single pass, one image per grid step."""
    B, H, W, C = y3_4d.shape
    Nq = wqkv.shape[1]
    return pl.pallas_call(
        _cca_kernel,
        out_shape=jax.ShapeDtypeStruct((B, H, W, C), jnp.float32),
        grid=(B,),
        in_specs=[pl.BlockSpec(memory_space=pltpu.MemorySpace.SMEM),   # gamma (1,)
                  pl.BlockSpec((H, H), lambda b: (0, 0)),              # diag mask
                  pl.BlockSpec((1, H, W, C), lambda b: (b, 0, 0, 0)),  # y3 (bf16)
                  pl.BlockSpec((1, H, W, C), lambda b: (b, 0, 0, 0)),  # residual
                  pl.BlockSpec((1, C), lambda b: (0, 0)),              # bn3 scale
                  pl.BlockSpec((1, C), lambda b: (0, 0)),              # bn3 shift
                  pl.BlockSpec((C, Nq), lambda b: (0, 0)),             # packed wqkv
                  pl.BlockSpec((1, Nq), lambda b: (0, 0))],            # packed bias
        out_specs=pl.BlockSpec((1, H, W, C), lambda b: (b, 0, 0, 0)),
        compiler_params=pltpu.CompilerParams(dimension_semantics=("parallel",)),
    )(gamma, mask, y3_4d, x_res, scale3, shift3, wqkv, bqkv)


# ----------------------------------------------------------------------------
# Glue: BN fold, parameter init, forward pass
# ----------------------------------------------------------------------------
def _bn_affine(s, ss, g, b, count, eps=1e-5):
    """Training-mode BatchNorm folded to per-channel (scale, shift) from (sum, sum_sq).
    Biased variance; E[y^2]-mean^2 is clamped at 0 (documented trade-off vs a
    second full pass / Welford merge)."""
    mean = s / count
    var = jnp.maximum(ss / count - mean * mean, 0.0)
    scale = g.reshape(1, -1) * jax.lax.rsqrt(var + eps)
    shift = b.reshape(1, -1) - mean * scale
    return scale, shift


def init_params(key, inplanes, planes, stride=1):
    """Synthetic parameters.  1x1 conv weights stored as (Cin, Cout); conv2 stored
    HWIO (3, 3, Cin, Cout); CCA q/k/v 1x1 convs as (Cin, Cout) + bias."""
    C4 = planes * 4
    Cq = max(C4 // 8, 1)
    ks = jax.random.split(key, 15)
    std = 0.1
    p = {'stride': stride}
    p['w1'] = std * jax.random.normal(ks[0], (inplanes, planes), jnp.float32)
    p['w2'] = std * jax.random.normal(ks[1], (3, 3, planes, planes), jnp.float32)
    p['w3'] = std * jax.random.normal(ks[2], (planes, C4), jnp.float32)
    p['bn1_g'] = 1.0 + std * jax.random.normal(ks[3], (planes,), jnp.float32)
    p['bn1_b'] = std * jax.random.normal(ks[4], (planes,), jnp.float32)
    p['bn2_g'] = 1.0 + std * jax.random.normal(ks[5], (planes,), jnp.float32)
    p['bn2_b'] = std * jax.random.normal(ks[6], (planes,), jnp.float32)
    p['bn3_g'] = 1.0 + std * jax.random.normal(ks[7], (C4,), jnp.float32)
    p['bn3_b'] = std * jax.random.normal(ks[8], (C4,), jnp.float32)
    p['wq'] = std * jax.random.normal(ks[9], (C4, Cq), jnp.float32)
    p['bq'] = std * jax.random.normal(ks[10], (Cq,), jnp.float32)
    p['wk'] = std * jax.random.normal(ks[11], (C4, Cq), jnp.float32)
    p['bk'] = std * jax.random.normal(ks[12], (Cq,), jnp.float32)
    p['wv'] = std * jax.random.normal(ks[13], (C4, C4), jnp.float32)
    p['bv'] = std * jax.random.normal(ks[14], (C4,), jnp.float32)
    # torch initialises the CCA gamma to 0.0 (identity); use 0.5 so attention runs.
    p['cca_gamma'] = jnp.array([0.5], jnp.float32)
    return p


def bottleneck_forward(x_nchw, params, *, eps=1e-5):
    """Bottleneck.forward with downsample=None (stride==1, inplanes==4*planes)."""
    B, Cin, H, W = x_nchw.shape
    x = jnp.transpose(x_nchw, (0, 2, 3, 1)).astype(jnp.float32)     # NHWC
    xb = x.astype(jnp.bfloat16)            # bf16 at the HBM boundary (conv1 + residual)
    M = B * H * W
    planes = params['w1'].shape[1]
    C4 = params['w3'].shape[1]
    assert params['stride'] == 1 and Cin == C4, \
        "downsample=None residual path requires stride==1 and inplanes==4*planes"
    # TODO(synk): stride>1 / downsample branch of Bottleneck is not implemented.

    bf16 = jnp.bfloat16
    w1 = params['w1'].astype(bf16)
    w2_taps = params['w2'].reshape(9, planes, planes).astype(bf16)
    w3 = params['w3'].astype(bf16)
    wqkv = jnp.concatenate([params['wq'], params['wk'], params['wv']],
                           axis=1).astype(bf16)
    bqkv = jnp.concatenate([params['bq'], params['bk'], params['bv']]
                           ).reshape(1, -1).astype(jnp.float32)

    # conv1 (1x1): tiled matmul, cross-tile BN1 statistics (no extra HBM pass).
    y1, s1, ss1 = conv1x1_stats(xb.reshape(M, Cin), w1)
    sc1, sh1 = _bn_affine(s1, ss1, params['bn1_g'], params['bn1_b'], M, eps)

    # conv2 (3x3, pad=1): bn1+relu fused into the prologue, halo kept in VMEM.
    y2, s2, ss2 = conv3x3_bn_in_stats(y1.reshape(B, H, W, planes), sc1, sh1, w2_taps)
    sc2, sh2 = _bn_affine(s2, ss2, params['bn2_g'], params['bn2_b'], M, eps)

    # conv3 (1x1): bn2+relu fused into the prologue, emits BN3 statistics.
    y3, s3, ss3 = conv1x1_bn_in_stats(y2.reshape(M, planes), sc2, sh2, w3)
    sc3, sh3 = _bn_affine(s3, ss3, params['bn3_g'], params['bn3_b'], M, eps)

    # bn3 + criss-cross attention + residual + ReLU fused in one kernel; the only
    # remaining XLA pass is the NHWC -> NCHW transpose of the final output.
    mask = jnp.where(jnp.eye(H, dtype=bool), -jnp.inf, 0.0).astype(jnp.float32)
    out = cca_residual_out(params['cca_gamma'], mask, y3.reshape(B, H, W, C4), xb,
                           sc3, sh3, wqkv, bqkv)
    return jnp.transpose(out, (0, 3, 1, 2))                          # back to NCHW


# ----------------------------------------------------------------------------
# Pure-JAX reference (module semantics, f32) for a sanity check
# ----------------------------------------------------------------------------
def bottleneck_reference(x_nchw, params, eps=1e-5):
    x = jnp.transpose(x_nchw, (0, 2, 3, 1)).astype(jnp.float32)
    B, H, W, Cin = x.shape
    planes = params['w1'].shape[1]
    C4 = params['w3'].shape[1]

    def bn(y2d, g, b):
        mean = jnp.mean(y2d, axis=0, keepdims=True)
        var = jnp.mean(y2d * y2d, axis=0, keepdims=True) - mean * mean
        return (y2d - mean) * jax.lax.rsqrt(var + eps) * g[None, :] + b[None, :]

    y = x.reshape(-1, Cin) @ params['w1']
    y = jnp.maximum(bn(y, params['bn1_g'], params['bn1_b']), 0.0)
    y = jax.lax.conv_general_dilated(
        y.reshape(B, H, W, planes), params['w2'], (1, 1), ((1, 1), (1, 1)),
        dimension_numbers=('NHWC', 'HWIO', 'NHWC'))
    y = jnp.maximum(bn(y.reshape(-1, planes), params['bn2_g'], params['bn2_b']), 0.0)
    y = bn(y @ params['w3'], params['bn3_g'], params['bn3_b'])
    q = (y @ params['wq'] + params['bq']).reshape(B, H, W, -1)
    k = (y @ params['wk'] + params['bk']).reshape(B, H, W, -1)
    v = (y @ params['wv'] + params['bv']).reshape(B, H, W, C4)
    y4 = y.reshape(B, H, W, C4)
    e_h = jnp.einsum('bhwc,bpwc->bhwp', q, k)
    e_h = jnp.where(jnp.eye(H, dtype=bool)[None, :, None, :], -jnp.inf, e_h)
    e_w = jnp.einsum('bhwc,bhpc->bhwp', q, k)
    att = jax.nn.softmax(jnp.concatenate([e_h, e_w], axis=-1), axis=-1)
    out_h = jnp.einsum('bhwp,bpwc->bhwc', att[..., :H], v)
    out_w = jnp.einsum('bhwp,bhpc->bhwc', att[..., H:], v)
    cca = params['cca_gamma'][0] * (out_h + out_w) + y4
    out = jnp.maximum(cca + x, 0.0)
    return jnp.transpose(out, (0, 3, 1, 2))


if __name__ == "__main__":
    key = jax.random.PRNGKey(0)
    k_params, k_x = jax.random.split(key)

    # Bottleneck(inplanes=32, planes=8, stride=1, downsample=None) -> 32 out channels
    B, planes, H, W = 2, 8, 8, 8
    inplanes = planes * 4
    params = init_params(k_params, inplanes, planes, stride=1)
    x = jax.random.normal(k_x, (B, inplanes, H, W), jnp.float32)

    out = bottleneck_forward(x, params)
    jax.block_until_ready(out)

    ref = bottleneck_reference(x, params)
    assert out.shape == (B, planes * 4, H, W)
    # Tolerance accounts for bf16 HBM I/O / bf16 MXU operands + approx reciprocal
    # against the pure-f32 reference.
    max_err = float(jnp.max(jnp.abs(out - ref)))
    assert jnp.allclose(out, ref, rtol=1e-1, atol=1e-1), \
        f"mismatch vs pure-JAX reference (max |diff| = {max_err})"
    print("KERNEL_OK")
</pallas_src>

<mosaic_0001>
module attributes {stable_mosaic.version = 11 : i64} {
  func.func @_mm_stats_kernel(%arg0: i32, %arg1: i32, %arg2: memref<128x32xbf16, #tpu.memory_space<vmem>>, %arg3: memref<32x8xbf16, #tpu.memory_space<vmem>>, %arg4: memref<128x8xbf16, #tpu.memory_space<vmem>>, %arg5: memref<1x8xf32, #tpu.memory_space<vmem>>, %arg6: memref<1x8xf32, #tpu.memory_space<vmem>>, %arg7: memref<128x8xf32, #tpu.memory_space<vmem>>) attributes {dimension_semantics = [#tpu.dimension_semantics<arbitrary>, #tpu.dimension_semantics<arbitrary>], iteration_bounds = array<i64: 1, 1>, scalar_prefetch = 0 : i64, scratch_operands = 1 : i64, tpu.core_type = #tpu.core_type<tc>, window_params = [{transform_indices = @transform_0, window_bounds = array<i64: 128, 32>}, {transform_indices = @transform_1, window_bounds = array<i64: 32, 8>}, {transform_indices = @transform_2, window_bounds = array<i64: 128, 8>}, {pipeline_mode = #tpu.pipeline_mode<synchronous>, transform_indices = @transform_3, window_bounds = array<i64: 1, 8>}, {pipeline_mode = #tpu.pipeline_mode<synchronous>, transform_indices = @transform_4, window_bounds = array<i64: 1, 8>}]} {
    %c0_i32 = arith.constant 0 : i32
    %0 = arith.cmpi eq, %arg0, %c0_i32 : i32
    %c0_i32_0 = arith.constant 0 : i32
    %1 = arith.cmpi eq, %arg1, %c0_i32_0 : i32
    %2 = arith.andi %0, %1 : i1
    %3 = arith.extui %2 : i1 to i32
    %c0_i32_1 = arith.constant 0 : i32
    %4 = arith.cmpi ne, %3, %c0_i32_1 : i32
    scf.if %4 {
      %cst_13 = arith.constant 0.000000e+00 : f32
      %17 = vector.broadcast %cst_13 : f32 to vector<1x8xf32>
      %c0_14 = arith.constant 0 : index
      %c0_15 = arith.constant 0 : index
      %18 = vector.load %arg5[%c0_14, %c0_15] : memref<1x8xf32, #tpu.memory_space<vmem>>, vector<1x8xf32>
      tpu.vector_store %arg5[%c0_14, %c0_15], %17 {strides = array<i32>} : memref<1x8xf32, #tpu.memory_space<vmem>>, vector<1x8xf32>,
      %cst_16 = arith.constant 0.000000e+00 : f32
      %19 = vector.broadcast %cst_16 : f32 to vector<1x8xf32>
      %c0_17 = arith.constant 0 : index
      %c0_18 = arith.constant 0 : index
      %20 = vector.load %arg6[%c0_17, %c0_18] : memref<1x8xf32, #tpu.memory_space<vmem>>, vector<1x8xf32>
      tpu.vector_store %arg6[%c0_17, %c0_18], %19 {strides = array<i32>} : memref<1x8xf32, #tpu.memory_space<vmem>>, vector<1x8xf32>,
    } else {
    }
    %c0_i32_2 = arith.constant 0 : i32
    %5 = arith.cmpi eq, %arg1, %c0_i32_2 : i32
    %6 = arith.extui %5 : i1 to i32
    %c0_i32_3 = arith.constant 0 : i32
    %7 = arith.cmpi ne, %6, %c0_i32_3 : i32
    scf.if %7 {
      %cst_13 = arith.constant 0.000000e+00 : f32
      %17 = vector.broadcast %cst_13 : f32 to vector<128x8xf32>
      %c0_14 = arith.constant 0 : index
      %c0_15 = arith.constant 0 : index
      %18 = vector.load %arg7[%c0_14, %c0_15] : memref<128x8xf32, #tpu.memory_space<vmem>>, vector<128x8xf32>
      tpu.vector_store %arg7[%c0_14, %c0_15], %17 {strides = array<i32>} : memref<128x8xf32, #tpu.memory_space<vmem>>, vector<128x8xf32>,
    } else {
    }
    %c0 = arith.constant 0 : index
    %c0_4 = arith.constant 0 : index
    %8 = vector.load %arg7[%c0, %c0_4] : memref<128x8xf32, #tpu.memory_space<vmem>>, vector<128x8xf32>
    %c0_5 = arith.constant 0 : index
    %c0_6 = arith.constant 0 : index
    %9 = vector.load %arg2[%c0_5, %c0_6] : memref<128x32xbf16, #tpu.memory_space<vmem>>, vector<128x32xbf16>
    %c0_7 = arith.constant 0 : index
    %c0_8 = arith.constant 0 : index
    %10 = vector.load %arg3[%c0_7, %c0_8] : memref<32x8xbf16, #tpu.memory_space<vmem>>, vector<32x8xbf16>
    %cst = arith.constant dense<0.000000e+00> : vector<128x8xf32>
    %11 = tpu.matmul %9, %10, %cst {dimension_numbers = #tpu.dot_dimension_numbers<[1], [0], [0], [1], [0, 0, 1, 1], [], []>} : vector<128x32xbf16>, vector<32x8xbf16>, vector<128x8xf32> -> vector<128x8xf32>
    %12 = arith.addf %8, %11 : vector<128x8xf32>
    %c0_9 = arith.constant 0 : index
    %c0_10 = arith.constant 0 : index
    %13 = vector.load %arg7[%c0_9, %c0_10] : memref<128x8xf32, #tpu.memory_space<vmem>>, vector<128x8xf32>
    tpu.vector_store %arg7[%c0_9, %c0_10], %12 {strides = array<i32>} : memref<128x8xf32, #tpu.memory_space<vmem>>, vector<128x8xf32>,
    %c0_i32_11 = arith.constant 0 : i32
    %14 = arith.cmpi eq, %arg1, %c0_i32_11 : i32
    %15 = arith.extui %14 : i1 to i32
    %c0_i32_12 = arith.constant 0 : i32
    %16 = arith.cmpi ne, %15, %c0_i32_12 : i32
    scf.if %16 {
      %c0_13 = arith.constant 0 : index
      %c0_14 = arith.constant 0 : index
      %17 = vector.load %arg7[%c0_13, %c0_14] : memref<128x8xf32, #tpu.memory_space<vmem>>, vector<128x8xf32>
      %18 = arith.truncf %17 : vector<128x8xf32> to vector<128x8xbf16>
      %c0_15 = arith.constant 0 : index
      %c0_16 = arith.constant 0 : index
      %19 = vector.load %arg4[%c0_15, %c0_16] : memref<128x8xbf16, #tpu.memory_space<vmem>>, vector<128x8xbf16>
      tpu.vector_store %arg4[%c0_15, %c0_16], %18 {strides = array<i32>} : memref<128x8xbf16, #tpu.memory_space<vmem>>, vector<128x8xbf16>,
      %c0_17 = arith.constant 0 : index
      %c0_18 = arith.constant 0 : index
      %20 = vector.load %arg5[%c0_17, %c0_18] : memref<1x8xf32, #tpu.memory_space<vmem>>, vector<1x8xf32>
      %cst_19 = arith.constant dense<0.000000e+00> : vector<8xf32>
      %21 = vector.multi_reduction <add>, %17, %cst_19 [0] : vector<128x8xf32> to vector<8xf32>
      %22 = vector.shape_cast %21 : vector<8xf32> to vector<1x8xf32>
      %23 = arith.addf %20, %22 : vector<1x8xf32>
      %c0_20 = arith.constant 0 : index
      %c0_21 = arith.constant 0 : index
      %24 = vector.load %arg5[%c0_20, %c0_21] : memref<1x8xf32, #tpu.memory_space<vmem>>, vector<1x8xf32>
      tpu.vector_store %arg5[%c0_20, %c0_21], %23 {strides = array<i32>} : memref<1x8xf32, #tpu.memory_space<vmem>>, vector<1x8xf32>,
      %c0_22 = arith.constant 0 : index
      %c0_23 = arith.constant 0 : index
      %25 = vector.load %arg6[%c0_22, %c0_23] : memref<1x8xf32, #tpu.memory_space<vmem>>, vector<1x8xf32>
      %26 = arith.mulf %17, %17 : vector<128x8xf32>
      %cst_24 = arith.constant dense<0.000000e+00> : vector<8xf32>
      %27 = vector.multi_reduction <add>, %26, %cst_24 [0] : vector<128x8xf32> to vector<8xf32>
      %28 = vector.shape_cast %27 : vector<8xf32> to vector<1x8xf32>
      %29 = arith.addf %25, %28 : vector<1x8xf32>
      %c0_25 = arith.constant 0 : index
      %c0_26 = arith.constant 0 : index
      %30 = vector.load %arg6[%c0_25, %c0_26] : memref<1x8xf32, #tpu.memory_space<vmem>>, vector<1x8xf32>
      tpu.vector_store %arg6[%c0_25, %c0_26], %29 {strides = array<i32>} : memref<1x8xf32, #tpu.memory_space<vmem>>, vector<1x8xf32>,
    } else {
    }
    return
  }
  func.func @transform_0(%arg0: i32, %arg1: i32) -> (i32, i32) {
    %c0_i32 = arith.constant 0 : i32
    return %arg0, %arg1 : i32, i32
  }
  func.func @transform_1(%arg0: i32, %arg1: i32) -> (i32, i32) {
    %c0_i32 = arith.constant 0 : i32
    %c0_i32_0 = arith.constant 0 : i32
    return %arg1, %c0_i32 : i32, i32
  }
  func.func @transform_2(%arg0: i32, %arg1: i32) -> (i32, i32) {
    %c0_i32 = arith.constant 0 : i32
    %c0_i32_0 = arith.constant 0 : i32
    return %arg0, %c0_i32 : i32, i32
  }
  func.func @transform_3(%arg0: i32, %arg1: i32) -> (i32, i32) {
    %c0_i32 = arith.constant 0 : i32
    %c0_i32_0 = arith.constant 0 : i32
    %c0_i32_1 = arith.constant 0 : i32
    return %c0_i32, %c0_i32_0 : i32, i32
  }
  func.func @transform_4(%arg0: i32, %arg1: i32) -> (i32, i32) {
    %c0_i32 = arith.constant 0 : i32
    %c0_i32_0 = arith.constant 0 : i32
    %c0_i32_1 = arith.constant 0 : i32
    return %c0_i32, %c0_i32_0 : i32, i32
  }
}

</mosaic_0001>

<bundles_post_ra>
// kernel: tpu_custom_call.1
= control target key start
LH: loop header
LB: loop body
LE: loop exit
PB: predicated region body
PF: predicated region fallthrough
CT: control target
= control target key end

     0   :  { %10 = vsyncpa [#allocation4], 0  ;;  %vm134_vm0 = vcmask 261120   ;;  %vm29_vm1 = vcmask 64512   ;;  %v659_v3 = vmov 0.0   ;;  %s912_s0 = inlined_call_operand.vmem [shape: bf16[128,32], index: 0, kind: input, shape index: {}]   ;;  %s913_s1 = inlined_call_operand.vmem [shape: bf16[32,8], index: 1, kind: input, shape index: {}]   ;;  %s914_s2 = inlined_call_operand.vmem [shape: bf16[128,8], index: 2, kind: output, shape index: {0}]   ;;  %s915_s3 = inlined_call_operand.hbm [shape: f32[1,8], index: 3, kind: output, shape index: {1}]   ;;  %s916_s4 = inlined_call_operand.hbm [shape: f32[1,8], index: 4, kind: output, shape index: {2}]  }
   0x1   :  { %v605_v0 = vld [vmem:[%s913_s1 + $0x8] sm:$0xff]   ;;  %v606_v1 = vld [vmem:[%s913_s1] sm:$0xff]   ;;  %32 = vst.msk [vmem:[#allocation2 + $0x10] sm:$0xff] %vm29_vm1, %v659_v3  ;;  %30 = vst.msk [vmem:[#allocation2] sm:$0xff] %vm29_vm1, %v659_v3 }
   0x2   :  { %578 = vmatprep.subr.bf16.mxu0 %v605_v0  ;;  %v607_v2 = vld [vmem:[%s912_s0] sm:$0xff]   ;;  %598 = vmatprep.subr.bf16.mxu1 %v605_v0  ;;  %31 = vst.msk [vmem:[#allocation2 + $0x8] sm:$0xff] %vm29_vm1, %v659_v3  ;;  %33 = vst.msk [vmem:[#allocation2 + $0x18] sm:$0xff] %vm29_vm1, %v659_v3  ;;  %v608_v4 = vld [vmem:[%s912_s0 + $0x8] sm:$0xff]  }
   0x3   :  { %579 = vmatpush3.bf16.msra.mxu0 %v605_v0  ;;  %600 = vmatpush3.bf16.msra.mxu1 %v605_v0  ;;  %34 = vst.msk [vmem:[#allocation2 + $0x20] sm:$0xff] %vm29_vm1, %v659_v3  ;;  %35 = vst.msk [vmem:[#allocation2 + $0x28] sm:$0xff] %vm29_vm1, %v659_v3  ;;  %v609_v5 = vld [vmem:[%s912_s0 + $0x10] sm:$0xff]   ;;  %v611_v6 = vld [vmem:[%s912_s0 + $0x20] sm:$0xff]  }
   0x4   :  { %36 = vst.msk [vmem:[#allocation2 + $0x30] sm:$0xff] %vm29_vm1, %v659_v3  ;;  %37 = vst.msk [vmem:[#allocation2 + $0x38] sm:$0xff] %vm29_vm1, %v659_v3  ;;  %580 = vmatprep.subr.bf16.mxu0 %v606_v1  ;;  %582 = vmatprep.mubr.msk.bf16.mxu0 %vm134_vm0, %v607_v2  ;;  %v612_v7 = vld [vmem:[%s912_s0 + $0x28] sm:$0xff]   ;;  %v613_v8 = vld [vmem:[%s912_s0 + $0x30] sm:$0xff]  }
   0x5   :  { %38 = vst.msk [vmem:[#allocation2 + $0x40] sm:$0xff] %vm29_vm1, %v659_v3  ;;  %39 = vst.msk [vmem:[#allocation2 + $0x48] sm:$0xff] %vm29_vm1, %v659_v3  ;;  %599 = vmatprep.subr.bf16.mxu1 %v606_v1  ;;  %590 = vmatprep.mubr.msk.bf16.mxu1 %vm134_vm0, %v611_v6 }
   0x6   :  { %40 = vst.msk [vmem:[#allocation2 + $0x50] sm:$0xff] %vm29_vm1, %v659_v3  ;;  %41 = vst.msk [vmem:[#allocation2 + $0x58] sm:$0xff] %vm29_vm1, %v659_v3 }
   0x7   :  { %42 = vst.msk [vmem:[#allocation2 + $0x60] sm:$0xff] %vm29_vm1, %v659_v3  ;;  %43 = vst.msk [vmem:[#allocation2 + $0x68] sm:$0xff] %vm29_vm1, %v659_v3  ;;  %581 = vmatpush3.bf16.msra.mxu0 %v606_v1  ;;  %601 = vmatpush3.bf16.msra.mxu1 %v606_v1 }
   0x8   :  { %44 = vst.msk [vmem:[#allocation2 + $0x70] sm:$0xff] %vm29_vm1, %v659_v3  ;;  %45 = vst.msk [vmem:[#allocation2 + $0x78] sm:$0xff] %vm29_vm1, %v659_v3 }
   0xa   :  { %583 = vmatmul.mubr.msk.bf16.vlgmr.msra.gmra.mxu0 %vm134_vm0, %v608_v4  ;;  %591 = vmatmul.mubr.msk.bf16.vlgmr.msra.gmra.mxu1 %vm134_vm0, %v612_v7 }
   0xb   :  { %11 = vsyncpa [#allocation6], 0  ;;  %586 = vmatprep.mubr.msk.bf16.mxu0 %vm134_vm0, %v609_v5  ;;  %594 = vmatprep.mubr.msk.bf16.mxu1 %vm134_vm0, %v613_v8  ;;  %v610_v9 = vld [vmem:[%s912_s0 + $0x18] sm:$0xff]   ;;  %vm23_vm2 = vcmask 57344   ;;  %v48_v11 = vld [vmem:[#allocation2 + $0x10] sm:$0xff]  ;;  %vm372_vm3 = vcmask 60416  }
   0xc   :  { %v614_v10 = vld [vmem:[%s912_s0 + $0x38] sm:$0xff]   ;;  %24 = vst.msk [vmem:[#allocation3] sm:$0x1] %vm23_vm2, %v659_v3  ;;  %25 = vst.msk [vmem:[#allocation5] sm:$0x1] %vm23_vm2, %v659_v3  ;;  %v46_v14 = vld [vmem:[#allocation2] sm:$0xff] }
   0xd   :  { %v56_v12 = vld [vmem:[#allocation2 + $0x50] sm:$0xff]  ;;  %v54_v16 = vld [vmem:[#allocation2 + $0x40] sm:$0xff]  ;;  %v49_v20 = vld [vmem:[#allocation2 + $0x18] sm:$0xff]  ;;  %s661_s12 = smov [#allocation5]  }
   0xe   :  { %v57_v22 = vld [vmem:[#allocation2 + $0x58] sm:$0xff]  ;;  %v47_v26 = vld [vmem:[#allocation2 + $0x8] sm:$0xff]  ;;  %v52_v32 = vld [vmem:[#allocation2 + $0x30] sm:$0xff]  ;;  %s504_s13 = sshll.u32 %s661_s12, 4  ;;  %s505_s13 = int_to_ptr.vmem [resolvable:$true] %s504_s13 }
   0xf   :  { %v55_v28 = vld [vmem:[#allocation2 + $0x48] sm:$0xff]  ;;  %v60_v34 = vld [vmem:[#allocation2 + $0x70] sm:$0xff]  ;;  %v50_v38 = vld [vmem:[#allocation2 + $0x20] sm:$0xff] }
  0x10   :  { %v58_v42 = vld [vmem:[#allocation2 + $0x60] sm:$0xff]  ;;  %v53_v45 = vld [vmem:[#allocation2 + $0x38] sm:$0xff]  ;;  %v51_v53 = vld [vmem:[#allocation2 + $0x28] sm:$0xff] }
  0x11   :  { %v61_v50 = vld [vmem:[#allocation2 + $0x78] sm:$0xff]  ;;  %v59_v60 = vld [vmem:[#allocation2 + $0x68] sm:$0xff] }
  0x12   :  { %587 = vmatmul.mubr.msk.bf16.gmra.mxu0 %vm134_vm0, %v610_v9  ;;  %595 = vmatmul.mubr.msk.bf16.gmra.mxu1 %vm134_vm0, %v614_v10 }
  0xca   :  { %v584_v13 = vpop.f32.mrf.mxu0  ;;  %v592_v15 = vpop.f32.mrf.mxu1 }
  0xcb   :  { %v258_v17 = vadd.f32 %v584_v13, %v48_v11  ;;  %v266_v18 = vadd.f32 %v592_v15, %v56_v12 }
  0xcc   :  { %v193_v19 = vpop.f32.mrf.mxu0  ;;  %v225_v21 = vpop.f32.mrf.mxu1 }
  0xcd   :  { %275 = vst.msk [vmem:[#allocation2 + $0x10] sm:$0xff] %vm29_vm1, %v258_v17  ;;  %v256_v23 = vadd.f32 %v193_v19, %v46_v14  ;;  %283 = vst.msk [vmem:[#allocation2 + $0x50] sm:$0xff] %vm29_vm1, %v266_v18  ;;  %v264_v24 = vadd.f32 %v225_v21, %v54_v16 }
  0xce   :  { %v585_v25 = vpop.f32.mrf.mxu0  ;;  %v593_v27 = vpop.f32.mrf.mxu1 }
  0xcf   :  { %273 = vst.msk [vmem:[#allocation2] sm:$0xff] %vm29_vm1, %v256_v23  ;;  %v259_v29 = vadd.f32 %v585_v25, %v49_v20  ;;  %281 = vst.msk [vmem:[#allocation2 + $0x40] sm:$0xff] %vm29_vm1, %v264_v24  ;;  %v267_v30 = vadd.f32 %v593_v27, %v57_v22 }
  0xd0   :  { %v196_v31 = vpop.f32.mrf.mxu0  ;;  %v228_v33 = vpop.f32.mrf.mxu1 }
  0xd1   :  { %276 = vst.msk [vmem:[#allocation2 + $0x18] sm:$0xff] %vm29_vm1, %v259_v29  ;;  %v257_v35 = vadd.f32 %v196_v31, %v47_v26  ;;  %284 = vst.msk [vmem:[#allocation2 + $0x58] sm:$0xff] %vm29_vm1, %v267_v30  ;;  %v265_v36 = vadd.f32 %v228_v33, %v55_v28 }
  0xd2   :  { %v588_v37 = vpop.f32.mrf.mxu0  ;;  %v596_v39 = vpop.f32.mrf.mxu1 }
  0xd3   :  { %274 = vst.msk [vmem:[#allocation2 + $0x8] sm:$0xff] %vm29_vm1, %v257_v35  ;;  %v262_v40 = vadd.f32 %v588_v37, %v52_v32  ;;  %282 = vst.msk [vmem:[#allocation2 + $0x48] sm:$0xff] %vm29_vm1, %v265_v36  ;;  %v270_v41 = vadd.f32 %v596_v39, %v60_v34 }
  0xd4   :  { %v294_v43 = vld [vmem:[#allocation2 + $0x10] sm:$0xff]  ;;  %v209_v44 = vpop.f32.mrf.mxu0  ;;  %v241_v46 = vpop.f32.mrf.mxu1 }
  0xd5   :  { %v751_v47 = vld [vmem:[#allocation2 + $0x50] sm:$0xff]  ;;  %v554_v48 = vpack.c.bf16 %v294_v43, %v294_v43  ;;  %279 = vst.msk [vmem:[#allocation2 + $0x30] sm:$0xff] %vm29_vm1, %v262_v40  ;;  %v260_v49 = vadd.f32 %v209_v44, %v50_v38  ;;  %287 = vst.msk [vmem:[#allocation2 + $0x70] sm:$0xff] %vm29_vm1, %v270_v41  ;;  %v268_v54 = vadd.f32 %v241_v46, %v58_v42  ;;  %v393_v18 = vsel %vm29_vm1, %v294_v43, 0.0 }
  0xd6   :  { %v292_v51 = vld [vmem:[#allocation2] sm:$0xff]  ;;  %v589_v52 = vpop.f32.mrf.mxu0  ;;  %v597_v55 = vpop.f32.mrf.mxu1  ;;  %v562_v57 = vpack.c.bf16 %v751_v47, %v751_v47  ;;  %v433_v22 = vmul.f32 %v294_v43, %v294_v43 }
  0xd7   :  { %v755_v56 = vld [vmem:[#allocation2 + $0x40] sm:$0xff]  ;;  %375 = vst.msk [vmem:[%s914_s2 + $0x8] sm:$0xf] %vm372_vm3, %v554_v48  ;;  %v552_v58 = vpack.c.bf16 %v292_v51, %v292_v51  ;;  %v263_v59 = vadd.f32 %v589_v52, %v53_v45  ;;  %v271_v63 = vadd.f32 %v597_v55, %v61_v50  ;;  %v390_v5 = vsel %vm29_vm1, %v292_v51, 0.0 }
  0xd8   :  { %277 = vst.msk [vmem:[#allocation2 + $0x20] sm:$0xff] %vm29_vm1, %v260_v49  ;;  %v295_v61 = vld [vmem:[#allocation2 + $0x18] sm:$0xff]  ;;  %v212_v62 = vpop.f32.mrf.mxu0  ;;  %285 = vst.msk [vmem:[#allocation2 + $0x60] sm:$0xff] %vm29_vm1, %v268_v54  ;;  %v244_v0 = vpop.f32.mrf.mxu1  ;;  %v560_v2 = vpack.c.bf16 %v755_v56, %v755_v56  ;;  %v431_v6 = vmul.f32 %v292_v51, %v292_v51  ;;  %v450_v41 = vsel %vm29_vm1, %v433_v22, 0.0 }
  0xd9   :  { %v765_v1 = vld [vmem:[#allocation2 + $0x58] sm:$0xff]  ;;  %383 = vst.msk [vmem:[%s914_s2 + $0x28] sm:$0xf] %vm372_vm3, %v562_v57  ;;  %373 = vst.msk [vmem:[%s914_s2] sm:$0xf] %vm372_vm3, %v552_v58  ;;  %v555_v3 = vpack.c.bf16 %v295_v61, %v295_v61  ;;  %v261_v4 = vadd.f32 %v212_v62, %v51_v53  ;;  %v269_v8 = vadd.f32 %v244_v0, %v59_v60  ;;  %v395_v28 = vsel %vm29_vm1, %v295_v61, 0.0 }
  0xda   :  { %280 = vst.msk [vmem:[#allocation2 + $0x38] sm:$0xff] %vm29_vm1, %v263_v59  ;;  %v293_v7 = vld [vmem:[#allocation2 + $0x8] sm:$0xff]  ;;  %288 = vst.msk [vmem:[#allocation2 + $0x78] sm:$0xff] %vm29_vm1, %v271_v63  ;;  %v563_v10 = vpack.c.bf16 %v765_v1, %v765_v1  ;;  %v447_v23 = vsel %vm29_vm1, %v431_v6, 0.0  ;;  %v434_v33 = vmul.f32 %v295_v61, %v295_v61  ;;  %v405_v61 = vsel %vm29_vm1, %v755_v56, 0.0 }
  0xdb   :  { %v780_v9 = vld [vmem:[#allocation2 + $0x48] sm:$0xff]  ;;  %381 = vst.msk [vmem:[%s914_s2 + $0x20] sm:$0xf] %vm372_vm3, %v560_v2  ;;  %376 = vst.msk [vmem:[%s914_s2 + $0xc] sm:$0xf] %vm372_vm3, %v555_v3  ;;  %v553_v11 = vpack.c.bf16 %v293_v7, %v293_v7  ;;  %v391_v12 = vsel %vm29_vm1, %v293_v7, 0.0  ;;  %v432_v13 = vmul.f32 %v293_v7, %v293_v7  ;;  %v439_v3 = vmul.f32 %v755_v56, %v755_v56 }
  0xdc   :  { %278 = vst.msk [vmem:[#allocation2 + $0x28] sm:$0xff] %vm29_vm1, %v261_v4  ;;  %v561_v14 = vpack.c.bf16 %v780_v9, %v780_v9  ;;  %v392_v15 = vadd.f32 %v391_v12, %v390_v5  ;;  %286 = vst.msk [vmem:[#allocation2 + $0x68] sm:$0xff] %vm29_vm1, %v269_v8  ;;  %v298_v16 = vld [vmem:[#allocation2 + $0x30] sm:$0xff]  ;;  %v452_v51 = vsel %vm29_vm1, %v434_v33, 0.0  ;;  %v407_v2 = vsel %vm29_vm1, %v780_v9, 0.0 }
  0xdd   :  { %v797_v17 = vld [vmem:[#allocation2 + $0x70] sm:$0xff]  ;;  %384 = vst.msk [vmem:[%s914_s2 + $0x2c] sm:$0xf] %vm372_vm3, %v563_v10  ;;  %374 = vst.msk [vmem:[%s914_s2 + $0x4] sm:$0xf] %vm372_vm3, %v553_v11  ;;  %v448_v19 = vsel %vm29_vm1, %v432_v13, 0.0  ;;  %v558_v20 = vpack.c.bf16 %v298_v16, %v298_v16  ;;  %v437_v55 = vmul.f32 %v298_v16, %v298_v16  ;;  %v440_v8 = vmul.f32 %v780_v9, %v780_v9 }
  0xde   :  { %v566_v21 = vpack.c.bf16 %v797_v17, %v797_v17  ;;  %382 = vst.msk [vmem:[%s914_s2 + $0x24] sm:$0xf] %vm372_vm3, %v561_v14  ;;  %v394_v25 = vadd.f32 %v393_v18, %v392_v15  ;;  %v449_v29 = vadd.f32 %v448_v19, %v447_v23  ;;  %v401_v50 = vsel %vm29_vm1, %v298_v16, 0.0 }
  0xdf   :  { %v296_v24 = vld [vmem:[#allocation2 + $0x20] sm:$0xff]  ;;  %379 = vst.msk [vmem:[%s914_s2 + $0x18] sm:$0xf] %vm372_vm3, %v558_v20  ;;  %v458_v4 = vsel %vm29_vm1, %v437_v55, 0.0  ;;  %v409_v7 = vsel %vm29_vm1, %v751_v47, 0.0  ;;  %v411_v13 = vsel %vm29_vm1, %v765_v1, 0.0  ;;  %v441_v56 = vmul.f32 %v751_v47, %v751_v47 }
  0xe0   :  { %v556_v26 = vpack.c.bf16 %v296_v24, %v296_v24  ;;  %v816_v27 = vld [vmem:[#allocation2 + $0x60] sm:$0xff]  ;;  %387 = vst.msk [vmem:[%s914_s2 + $0x38] sm:$0xf] %vm372_vm3, %v566_v21  ;;  %v396_v32 = vadd.f32 %v395_v28, %v394_v25  ;;  %v397_v36 = vsel %vm29_vm1, %v296_v24, 0.0  ;;  %v435_v40 = vmul.f32 %v296_v24, %v296_v24 }
  0xe1   :  { %v299_v30 = vld [vmem:[#allocation2 + $0x38] sm:$0xff]  ;;  %v564_v31 = vpack.c.bf16 %v816_v27, %v816_v27  ;;  %v451_v46 = vadd.f32 %v450_v41, %v449_v29  ;;  %v462_v14 = vsel %vm29_vm1, %v439_v3, 0.0  ;;  %v413_v18 = vsel %vm29_vm1, %v816_v27, 0.0 }
  0xe2   :  { %377 = vst.msk [vmem:[%s914_s2 + $0x10] sm:$0xf] %vm372_vm3, %v556_v26  ;;  %v833_v34 = vld [vmem:[#allocation2 + $0x78] sm:$0xff]  ;;  %v559_v35 = vpack.c.bf16 %v299_v30, %v299_v30  ;;  %v398_v39 = vadd.f32 %v397_v36, %v396_v32  ;;  %v403_v54 = vsel %vm29_vm1, %v299_v30, 0.0  ;;  %v454_v57 = vsel %vm29_vm1, %v435_v40, 0.0 }
  0xe3   :  { %v297_v37 = vld [vmem:[#allocation2 + $0x28] sm:$0xff]  ;;  %v567_v38 = vpack.c.bf16 %v833_v34, %v833_v34  ;;  %385 = vst.msk [vmem:[%s914_s2 + $0x30] sm:$0xf] %vm372_vm3, %v564_v31  ;;  %v453_v53 = vadd.f32 %v452_v51, %v451_v46  ;;  %v438_v62 = vmul.f32 %v299_v30, %v299_v30  ;;  %v442_v9 = vmul.f32 %v765_v1, %v765_v1 }
  0xe4   :  { %v305_v42 = vld [vmem:[#allocation2 + $0x68] sm:$0xff]  ;;  %v557_v43 = vpack.c.bf16 %v297_v37, %v297_v37  ;;  %380 = vst.msk [vmem:[%s914_s2 + $0x1c] sm:$0xf] %vm372_vm3, %v559_v35  ;;  %v399_v44 = vsel %vm29_vm1, %v297_v37, 0.0  ;;  %v436_v45 = vmul.f32 %v297_v37, %v297_v37  ;;  %v464_v19 = vsel %vm29_vm1, %v440_v8, 0.0 }
  0xe5   :  { %v565_v48 = vpack.c.bf16 %v305_v42, %v305_v42  ;;  %388 = vst.msk [vmem:[%s914_s2 + $0x3c] sm:$0xf] %vm372_vm3, %v567_v38  ;;  %v400_v49 = vadd.f32 %v399_v44, %v398_v39  ;;  %v455_v60 = vadd.f32 %v454_v57, %v453_v53  ;;  %v460_v10 = vsel %vm29_vm1, %v438_v62, 0.0 }
  0xe6   :  { %378 = vst.msk [vmem:[%s914_s2 + $0x14] sm:$0xf] %vm372_vm3, %v557_v43  ;;  %v456_v58 = vsel %vm29_vm1, %v436_v45, 0.0  ;;  %v415_v22 = vsel %vm29_vm1, %v305_v42, 0.0  ;;  %v443_v23 = vmul.f32 %v816_v27, %v816_v27  ;;  %v466_v47 = vsel %vm29_vm1, %v441_v56, 0.0 }
  0xe7   :  { %386 = vst.msk [vmem:[%s914_s2 + $0x34] sm:$0xf] %vm372_vm3, %v565_v48  ;;  %v402_v52 = vadd.f32 %v401_v50, %v400_v49  ;;  %v457_v0 = vadd.f32 %v456_v58, %v455_v60  ;;  %v417_v26 = vsel %vm29_vm1, %v797_v17, 0.0  ;;  %v444_v28 = vmul.f32 %v305_v42, %v305_v42  ;;  %v389_v50 = vld [vmem:[#allocation3] sm:$0x1]  ;;  %s660_s2 = smov [#allocation3]  }
  0xe8   :  { %v468_v29 = vsel %vm29_vm1, %v442_v9, 0.0  ;;  %v419_v31 = vsel %vm29_vm1, %v833_v34, 0.0  ;;  %v445_v32 = vmul.f32 %v797_v17, %v797_v17  ;;  %v470_v27 = vsel %vm29_vm1, %v443_v23, 0.0  ;;  %s494_s11 = sshll.u32 %s660_s2, 4  ;;  %s495_s11 = int_to_ptr.vmem [resolvable:$true] %s494_s11 }
  0xe9   :  { %v404_v59 = vadd.f32 %v403_v54, %v402_v52  ;;  %v459_v6 = vadd.f32 %v458_v4, %v457_v0  ;;  %v446_v36 = vmul.f32 %v833_v34, %v833_v34  ;;  %v472_v37 = vsel %vm29_vm1, %v444_v28, 0.0  ;;  %s615_s14 = scalar_lea.vmem %s495_s11, 16  ;;  %s619_s15 = scalar_lea.vmem %s495_s11, 32 }
  0xea   :  { %v474_v40 = vsel %vm29_vm1, %v445_v32, 0.0  ;;  %p616_p0 = scmp.ne.s32.totalorder %s495_s11, %s615_s14  ;;  %p620_p1 = scmp.lt.s32.totalorder %s495_s11, %s495_s11 }
  0xeb   :  { %v406_v63 = vadd.f32 %v405_v61, %v404_v59  ;;  %v461_v12 = vadd.f32 %v460_v10, %v459_v6  ;;  %v476_v43 = vsel %vm29_vm1, %v446_v36, 0.0  ;;  %p621_p2 = scmp.lt.s32.totalorder %s619_s15, %s615_s14 }
  0xed   :  { %v408_v5 = vadd.f32 %v407_v2, %v406_v63  ;;  %v463_v16 = vadd.f32 %v462_v14, %v461_v12  ;;  %p622_p3 = por %p621_p2, %p620_p1 }
  0xef   :  { %v410_v11 = vadd.f32 %v409_v7, %v408_v5  ;;  %v465_v21 = vadd.f32 %v464_v19, %v463_v16  ;;  %p623_p4 = pnand %p622_p3, %p616_p0 }
  0xf1   :  { %v412_v15 = vadd.f32 %v411_v13, %v410_v11  ;;  %v467_v25 = vadd.f32 %v466_v47, %v465_v21 }
  0xf3   :  { %v414_v20 = vadd.f32 %v413_v18, %v412_v15  ;;  %v469_v30 = vadd.f32 %v468_v29, %v467_v25 }
  0xf5   :  { %v416_v24 = vadd.f32 %v415_v22, %v414_v20  ;;  %v471_v35 = vadd.f32 %v470_v27, %v469_v30 }
  0xf7   :  { %v418_v1 = vadd.f32 %v417_v26, %v416_v24  ;;  %v473_v39 = vadd.f32 %v472_v37, %v471_v35 }
  0xf9   :  { %v420_v33 = vadd.f32 %v419_v31, %v418_v1  ;;  %v475_v42 = vadd.f32 %v474_v40, %v473_v39 }
  0xfb   :  { %v421_v38 = vrot.slane %v420_v33, 4  ;;  %v477_v45 = vadd.f32 %v476_v43, %v475_v42 }
  0xfd   :  { %v422_v41 = vadd.f32 %v421_v38, %v420_v33  ;;  %v478_v46 = vrot.slane %v477_v45, 4 }
  0xff   :  { %v423_v44 = vrot.slane %v422_v41, 2  ;;  %v479_v49 = vadd.f32 %v478_v46, %v477_v45 }
 0x101   :  { %v424_v17 = vadd.f32 %v423_v44, %v422_v41  ;;  %v480_v51 = vrot.slane %v479_v49, 2 }
 0x103   :  { %v425_v48 = vrot.slane %v424_v17, 1  ;;  %v481_v53 = vadd.f32 %v480_v51, %v479_v49 }
 0x105   :  { %v426_v34 = vadd.f32 %v425_v48, %v424_v17  ;;  %v482_v54 = vrot.slane %v481_v53, 1 }
 0x107   :  { %v427_v52 = vadd.f32 %v426_v34, %v389_v50 }
 0x109   :  { %429 = vst.msk [vmem:[#allocation3] sm:$0x1] %vm23_vm2, %v427_v52 }
 0x10a   :  { %626 = shalt.err (!%p623_p4)
}
 0x10b   :  { %497 = dma.vmem_to_hbm [thread:$0]  %s495_s11, 16, %s915_s3, [#allocation4]   ;;  %v430_v55 = vld [vmem:[#allocation5] sm:$0x1]  ;;  %v483_v57 = vadd.f32 %v482_v54, %v481_v53 }
 0x10c   :  { %s635_s18 = scalar_lea.vmem %s505_s13, 16  ;;  %s639_s19 = scalar_lea.vmem %s505_s13, 32 }
 0x10d   :  { %v484_v58 = vadd.f32 %v483_v57, %v430_v55  ;;  %p636_p5 = scmp.ne.s32.totalorder %s505_s13, %s635_s18  ;;  %p640_p6 = scmp.lt.s32.totalorder %s505_s13, %s505_s13 }
 0x10e   :  { %p641_p7 = scmp.lt.s32.totalorder %s639_s19, %s635_s18 }
 0x10f   :  { %485 = vst.msk [vmem:[#allocation5] sm:$0x1] %vm23_vm2, %v484_v58 }
 0x110   :  { %p642_p8 = por %p641_p7, %p640_p6 }
 0x112   :  { %p643_p9 = pnand %p642_p8, %p636_p5 }
 0x114   :  { %646 = shalt.err (!%p643_p9)
}
 0x115   :  { %507 = dma.vmem_to_hbm [thread:$0]  %s505_s13, 16, %s916_s4, [#allocation6]  }
 0x116   :  { %655 = dma.done.wait [#allocation4], 16  }
 0x117   :  { %656 = vsyncadd [#allocation4], 4294967280 }
 0x118   :  { %657 = dma.done.wait [#allocation6], 16  }
 0x119   :  { %658 = vsyncadd [#allocation6], 4294967280 }
 0x11a   :  { %516 = vsyncpa [#allocation4], 1 }
 0x11b   :  { %517 = vsyncpa [#allocation6], 1 }

</bundles_post_ra>
